<compile_context>
chip_gen: v6e
topology: v6e:2x2x1
jax: 0.10.0
libtpu: 0.0.40
codegen_flags: <defaults>
</compile_context>

<pallas_src>
import jax
import jax.numpy as jnp
from jax.experimental import pallas as pl
from jax.experimental.pallas import tpu as pltpu


def _neuraldecipher_kernel(x_ref,
                           w1_ref, t1_ref,
                           w2_ref, t2_ref,
                           w3_ref, b3_ref,
                           o_ref):
    """Fused forward: tanh( relu( relu(x@W1' + t1) @ W2' + t2 ) @ W3 + b3 ).

    W1'/W2' already carry the folded eval-mode BatchNorm scale; the linear
    biases + BN shifts are folded into t1/t2.  Matmul operands are bf16,
    accumulation is f32 on the MXU; the affine adds and tanh stay in f32,
    only the final store is cast to the (bf16) output dtype.
    """
    # In-kernel f32 -> bf16 cast (free on the VPU; avoids a wrapper-side pass).
    x = x_ref[...].astype(jnp.bfloat16)

    # block 0: Linear (scale-folded) -> shift -> ReLU
    h1 = jnp.dot(x, w1_ref[...], preferred_element_type=jnp.float32)
    h1 = jnp.maximum(h1 + t1_ref[...], 0.0).astype(jnp.bfloat16)

    # block 1: Linear (scale-folded) -> shift -> ReLU
    h2 = jnp.dot(h1, w2_ref[...], preferred_element_type=jnp.float32)
    h2 = jnp.maximum(h2 + t2_ref[...], 0.0).astype(jnp.bfloat16)

    # output layer: Linear -> Tanh
    h3 = jnp.dot(h2, w3_ref[...], preferred_element_type=jnp.float32) + b3_ref[...]
    o_ref[...] = jnp.tanh(h3).astype(o_ref.dtype)


def _pick_batch_tile(B: int) -> int:
    """Pick a batch tile: multiple of 8, >= 2 grid steps when worthwhile
    (v7x megacore), capped at 2048 rows to amortize per-step overhead."""
    if B <= 64:
        return B                       # single tiny block; splitting isn't worth 0.35 us/step
    half = (B + 1) // 2                # aim for (at least) 2 grid steps
    half = ((half + 7) // 8) * 8       # multiple of 8 for the (8,128) rule
    return min(2048, half)


def neuraldecipher_forward(x, params, *, batch_tile=None):
    """Runs the fused Neuraldecipher forward pass.

    x: (B, D_in) float32 (cast to bf16 inside the kernel).
    params: dict with pre-transposed, scale-folded bf16 weights and f32 shifts.
    batch_tile: rows per grid step (multiple of 8, or equal to B). Auto-picked
                if None.  No host-side padding: the boundary block is ragged
                and Pallas masks its loads/stores.
    Returns: (B, D_out) bfloat16.
    """
    B, d_in = x.shape
    w1, t1 = params["w1"], params["t1"]
    w2, t2 = params["w2"], params["t2"]
    w3, b3 = params["w3"], params["b3"]
    d_h1 = w1.shape[1]
    d_h2 = w2.shape[1]
    d_out = w3.shape[1]

    if batch_tile is None:
        batch_tile = _pick_batch_tile(B)
    batch_tile = min(batch_tile, B)
    if batch_tile != B:
        # second-to-last block dim must be a multiple of 8 (or equal full B)
        batch_tile = max(8, (batch_tile // 8) * 8)

    grid = (pl.cdiv(B, batch_tile),)

    # Constant-index blocks: fetched once, resident in VMEM across the grid.
    full = lambda shape: pl.BlockSpec(shape, lambda i: (0, 0))

    flops = 2 * B * (d_in * d_h1 + d_h1 * d_h2 + d_h2 * d_out)
    bytes_accessed = (
        B * d_in * x.dtype.itemsize                           # x (as given, f32)
        + (w1.size + w2.size + w3.size) * 2                   # weights (bf16)
        + (t1.size + t2.size + b3.size) * 4                   # shifts (f32)
        + B * d_out * 2                                       # output (bf16)
    )
    cost = pl.CostEstimate(flops=flops,
                           transcendentals=B * d_out,         # tanh
                           bytes_accessed=bytes_accessed)

    return pl.pallas_call(
        _neuraldecipher_kernel,
        out_shape=jax.ShapeDtypeStruct((B, d_out), jnp.bfloat16),
        grid_spec=pltpu.PrefetchScalarGridSpec(
            num_scalar_prefetch=0,
            grid=grid,
            in_specs=[
                pl.BlockSpec((batch_tile, d_in), lambda i: (i, 0)),   # x (ragged boundary OK)
                full((d_in, d_h1)),                                    # w1 (scale folded)
                full((1, d_h1)),                                       # t1
                full((d_h1, d_h2)),                                    # w2 (scale folded)
                full((1, d_h2)),                                       # t2
                full((d_h2, d_out)),                                   # w3
                full((1, d_out)),                                      # b3
            ],
            out_specs=pl.BlockSpec((batch_tile, d_out), lambda i: (i, 0)),
        ),
        compiler_params=pltpu.CompilerParams(
            dimension_semantics=("parallel",),     # split tiles across TCs (v7x)
            vmem_limit_bytes=32 * 1024 * 1024,     # v7x scoped default; tile<=2048 fits easily
        ),
        cost_estimate=cost,
    )(x, w1, t1, w2, t2, w3, b3)


def _fold_bn(bias, gamma, beta, running_mean, running_var, eps=1e-5):
    """Fold Linear bias + eval-mode BatchNorm1d into (scale, shift).

    y = ((x@W^T + b) - mu) / sqrt(var + eps) * gamma + beta
      = (x@W^T) * a + (b * a + (beta - mu * a))     with a = gamma / sqrt(var+eps)
    """
    a = gamma / jnp.sqrt(running_var + eps)
    shift = bias * a + (beta - running_mean * a)
    return a, shift


def init_params(key, input_dim, layers, output_dim):
    """Deterministic synthetic parameters matching Neuraldecipher's shapes.

    Returns (kernel_params, raw_params):
      kernel_params: pre-transposed, BN-scale-folded bf16 weights + f32 shifts.
      raw_params:    original f32 PyTorch-layout params for an exact f32 reference.
    """
    dims = [input_dim] + layers + [output_dim]
    keys = jax.random.split(key, 8)
    ki = iter(keys)

    def linear(kw, kb, d_in, d_out):
        # (out, in) like torch Linear.weight
        w = jax.random.normal(kw, (d_out, d_in), jnp.float32) * (1.0 / jnp.sqrt(d_in))
        b = jax.random.normal(kb, (d_out,), jnp.float32) * 0.1
        return w, b

    def bn(k, d):
        ks = jax.random.split(k, 4)
        g = 1.0 + 0.1 * jax.random.normal(ks[0], (d,), jnp.float32)
        be = 0.1 * jax.random.normal(ks[1], (d,), jnp.float32)
        mu = 0.1 * jax.random.normal(ks[2], (d,), jnp.float32)
        var = 1.0 + 0.1 * jax.random.uniform(ks[3], (d,), jnp.float32)
        return g, be, mu, var

    w1, b1 = linear(next(ki), next(ki), dims[0], dims[1])
    g1, be1, mu1, var1 = bn(next(ki), dims[1])
    w2, b2 = linear(next(ki), next(ki), dims[1], dims[2])
    g2, be2, mu2, var2 = bn(next(ki), dims[2])
    w3, b3 = linear(next(ki), next(ki), dims[2], dims[3])

    s1, t1 = _fold_bn(b1, g1, be1, mu1, var1)
    s2, t2 = _fold_bn(b2, g2, be2, mu2, var2)

    kernel_params = dict(
        w1=(w1.T * s1[None, :]).astype(jnp.bfloat16),
        t1=t1[None, :].astype(jnp.float32),
        w2=(w2.T * s2[None, :]).astype(jnp.bfloat16),
        t2=t2[None, :].astype(jnp.float32),
        w3=w3.T.astype(jnp.bfloat16),
        b3=b3[None, :].astype(jnp.float32),
    )
    raw_params = dict(w1=w1, b1=b1, g1=g1, be1=be1, mu1=mu1, var1=var1,
                      w2=w2, b2=b2, g2=g2, be2=be2, mu2=mu2, var2=var2,
                      w3=w3, b3=b3)
    return kernel_params, raw_params


def reference_forward_bf16(x, p):
    """Plain-JAX reference with the same bf16-operand, BN-folded math."""
    xb = x.astype(jnp.bfloat16)
    h1 = jnp.maximum(
        jnp.dot(xb, p["w1"], preferred_element_type=jnp.float32) + p["t1"], 0.0
    ).astype(jnp.bfloat16)
    h2 = jnp.maximum(
        jnp.dot(h1, p["w2"], preferred_element_type=jnp.float32) + p["t2"], 0.0
    ).astype(jnp.bfloat16)
    return jnp.tanh(jnp.dot(h2, p["w3"], preferred_element_type=jnp.float32) + p["b3"])


def reference_forward_f32(x, rp, eps=1e-5):
    """Exact f32 eval-mode forward of the original module (unfolded params)."""
    h = x @ rp["w1"].T + rp["b1"]
    h = (h - rp["mu1"]) / jnp.sqrt(rp["var1"] + eps) * rp["g1"] + rp["be1"]
    h = jnp.maximum(h, 0.0)
    h = h @ rp["w2"].T + rp["b2"]
    h = (h - rp["mu2"]) / jnp.sqrt(rp["var2"] + eps) * rp["g2"] + rp["be2"]
    h = jnp.maximum(h, 0.0)
    return jnp.tanh(h @ rp["w3"].T + rp["b3"])


if __name__ == "__main__":
    # Shapes consistent with the module (Neuraldecipher(input_dim=256,
    # layers=[256, 128], output_dim=128) with normalization='batch',
    # activation='relu', use_tanh=True, norm_before=True, dropout=0.0).
    INPUT_DIM, LAYERS, OUTPUT_DIM = 256, [256, 128], 128

    key = jax.random.PRNGKey(0)
    k_param, k_x = jax.random.split(key)
    params, raw = init_params(k_param, INPUT_DIM, LAYERS, OUTPUT_DIM)

    # Small demo batch: single block (tile == B), no padding, no slicing.
    B_SMALL = 8
    x = jax.random.normal(k_x, (B_SMALL, INPUT_DIM), jnp.float32)
    out = jax.block_until_ready(neuraldecipher_forward(x, params))
    assert out.shape == (B_SMALL, OUTPUT_DIM)
    assert out.dtype == jnp.bfloat16
    out_f32 = out.astype(jnp.float32)
    ref_bf = reference_forward_bf16(x, params).astype(jnp.float32)
    ref_f32 = reference_forward_f32(x, raw)
    assert jnp.allclose(out_f32, ref_bf, atol=2e-2, rtol=2e-2), \
        "mismatch vs bf16 JAX reference (small)"
    assert jnp.allclose(out_f32, ref_f32, atol=3e-2, rtol=3e-2), \
        "mismatch vs f32 eval-mode reference (small)"

    # Ragged multi-tile path: B=500 -> tile 256, grid=(2,), last block masked;
    # exercises boundary handling and megacore split on v7x.
    B_BIG = 500
    x_big = jax.random.normal(jax.random.PRNGKey(1), (B_BIG, INPUT_DIM), jnp.float32)
    out_big = jax.block_until_ready(neuraldecipher_forward(x_big, params))
    assert out_big.shape == (B_BIG, OUTPUT_DIM)
    ref_big_f32 = reference_forward_f32(x_big, raw)
    assert jnp.allclose(out_big.astype(jnp.float32), ref_big_f32, atol=3e-2, rtol=3e-2), \
        "mismatch vs f32 eval-mode reference (big/ragged)"

    print("KERNEL_OK")
</pallas_src>

<mosaic_0001>
module attributes {stable_mosaic.version = 11 : i64} {
  func.func @_neuraldecipher_kernel(%arg0: i32, %arg1: memref<8x256xf32, #tpu.memory_space<vmem>>, %arg2: memref<256x256xbf16, #tpu.memory_space<vmem>>, %arg3: memref<1x256xf32, #tpu.memory_space<vmem>>, %arg4: memref<256x128xbf16, #tpu.memory_space<vmem>>, %arg5: memref<1x128xf32, #tpu.memory_space<vmem>>, %arg6: memref<128x128xbf16, #tpu.memory_space<vmem>>, %arg7: memref<1x128xf32, #tpu.memory_space<vmem>>, %arg8: memref<8x128xbf16, #tpu.memory_space<vmem>>) attributes {dimension_semantics = [#tpu.dimension_semantics<parallel>], iteration_bounds = array<i64: 1>, scalar_prefetch = 0 : i64, scratch_operands = 0 : i64, tpu.core_type = #tpu.core_type<tc>, window_params = [{transform_indices = @transform_0, window_bounds = array<i64: 8, 256>}, {pipeline_mode = #tpu.pipeline_mode<synchronous>, transform_indices = @transform_1, window_bounds = array<i64: 256, 256>}, {pipeline_mode = #tpu.pipeline_mode<synchronous>, transform_indices = @transform_2, window_bounds = array<i64: 1, 256>}, {pipeline_mode = #tpu.pipeline_mode<synchronous>, transform_indices = @transform_3, window_bounds = array<i64: 256, 128>}, {pipeline_mode = #tpu.pipeline_mode<synchronous>, transform_indices = @transform_4, window_bounds = array<i64: 1, 128>}, {pipeline_mode = #tpu.pipeline_mode<synchronous>, transform_indices = @transform_5, window_bounds = array<i64: 128, 128>}, {pipeline_mode = #tpu.pipeline_mode<synchronous>, transform_indices = @transform_6, window_bounds = array<i64: 1, 128>}, {transform_indices = @transform_7, window_bounds = array<i64: 8, 128>}]} {
    %c0 = arith.constant 0 : index
    %c0_0 = arith.constant 0 : index
    %0 = vector.load %arg1[%c0, %c0_0] : memref<8x256xf32, #tpu.memory_space<vmem>>, vector<8x256xf32>
    %1 = arith.truncf %0 : vector<8x256xf32> to vector<8x256xbf16>
    %c0_1 = arith.constant 0 : index
    %c0_2 = arith.constant 0 : index
    %2 = vector.load %arg2[%c0_1, %c0_2] : memref<256x256xbf16, #tpu.memory_space<vmem>>, vector<256x256xbf16>
    %cst = arith.constant dense<0.000000e+00> : vector<8x256xf32>
    %3 = tpu.matmul %1, %2, %cst {dimension_numbers = #tpu.dot_dimension_numbers<[1], [0], [0], [1], [0, 0, 1, 1], [], []>} : vector<8x256xbf16>, vector<256x256xbf16>, vector<8x256xf32> -> vector<8x256xf32>
    %c0_3 = arith.constant 0 : index
    %c0_4 = arith.constant 0 : index
    %4 = vector.load %arg3[%c0_3, %c0_4] : memref<1x256xf32, #tpu.memory_space<vmem>>, vector<1x256xf32>
    %5 = vector.broadcast %4 : vector<1x256xf32> to vector<8x256xf32>
    %6 = arith.addf %3, %5 : vector<8x256xf32>
    %cst_5 = arith.constant 0.000000e+00 : f32
    %7 = vector.broadcast %cst_5 : f32 to vector<8x256xf32>
    %8 = arith.maximumf %6, %7 : vector<8x256xf32>
    %9 = arith.truncf %8 : vector<8x256xf32> to vector<8x256xbf16>
    %c0_6 = arith.constant 0 : index
    %c0_7 = arith.constant 0 : index
    %10 = vector.load %arg4[%c0_6, %c0_7] : memref<256x128xbf16, #tpu.memory_space<vmem>>, vector<256x128xbf16>
    %cst_8 = arith.constant dense<0.000000e+00> : vector<8x128xf32>
    %11 = tpu.matmul %9, %10, %cst_8 {dimension_numbers = #tpu.dot_dimension_numbers<[1], [0], [0], [1], [0, 0, 1, 1], [], []>} : vector<8x256xbf16>, vector<256x128xbf16>, vector<8x128xf32> -> vector<8x128xf32>
    %c0_9 = arith.constant 0 : index
    %c0_10 = arith.constant 0 : index
    %12 = vector.load %arg5[%c0_9, %c0_10] : memref<1x128xf32, #tpu.memory_space<vmem>>, vector<1x128xf32>
    %13 = vector.broadcast %12 : vector<1x128xf32> to vector<8x128xf32>
    %14 = arith.addf %11, %13 : vector<8x128xf32>
    %cst_11 = arith.constant 0.000000e+00 : f32
    %15 = vector.broadcast %cst_11 : f32 to vector<8x128xf32>
    %16 = arith.maximumf %14, %15 : vector<8x128xf32>
    %17 = arith.truncf %16 : vector<8x128xf32> to vector<8x128xbf16>
    %c0_12 = arith.constant 0 : index
    %c0_13 = arith.constant 0 : index
    %18 = vector.load %arg6[%c0_12, %c0_13] : memref<128x128xbf16, #tpu.memory_space<vmem>>, vector<128x128xbf16>
    %cst_14 = arith.constant dense<0.000000e+00> : vector<8x128xf32>
    %19 = tpu.matmul %17, %18, %cst_14 {dimension_numbers = #tpu.dot_dimension_numbers<[1], [0], [0], [1], [0, 0, 1, 1], [], []>} : vector<8x128xbf16>, vector<128x128xbf16>, vector<8x128xf32> -> vector<8x128xf32>
    %c0_15 = arith.constant 0 : index
    %c0_16 = arith.constant 0 : index
    %20 = vector.load %arg7[%c0_15, %c0_16] : memref<1x128xf32, #tpu.memory_space<vmem>>, vector<1x128xf32>
    %21 = vector.broadcast %20 : vector<1x128xf32> to vector<8x128xf32>
    %22 = arith.addf %19, %21 : vector<8x128xf32>
    %23 = math.tanh %22 : vector<8x128xf32>
    %24 = arith.truncf %23 : vector<8x128xf32> to vector<8x128xbf16>
    %c0_17 = arith.constant 0 : index
    %c0_18 = arith.constant 0 : index
    %25 = vector.load %arg8[%c0_17, %c0_18] : memref<8x128xbf16, #tpu.memory_space<vmem>>, vector<8x128xbf16>
    tpu.vector_store %arg8[%c0_17, %c0_18], %24 {strides = array<i32>} : memref<8x128xbf16, #tpu.memory_space<vmem>>, vector<8x128xbf16>,
    return
  }
  func.func @transform_0(%arg0: i32) -> (i32, i32) {
    %c0_i32 = arith.constant 0 : i32
    %c0_i32_0 = arith.constant 0 : i32
    return %arg0, %c0_i32 : i32, i32
  }
  func.func @transform_1(%arg0: i32) -> (i32, i32) {
    %c0_i32 = arith.constant 0 : i32
    %c0_i32_0 = arith.constant 0 : i32
    %c0_i32_1 = arith.constant 0 : i32
    return %c0_i32, %c0_i32_0 : i32, i32
  }
  func.func @transform_2(%arg0: i32) -> (i32, i32) {
    %c0_i32 = arith.constant 0 : i32
    %c0_i32_0 = arith.constant 0 : i32
    %c0_i32_1 = arith.constant 0 : i32
    return %c0_i32, %c0_i32_0 : i32, i32
  }
  func.func @transform_3(%arg0: i32) -> (i32, i32) {
    %c0_i32 = arith.constant 0 : i32
    %c0_i32_0 = arith.constant 0 : i32
    %c0_i32_1 = arith.constant 0 : i32
    return %c0_i32, %c0_i32_0 : i32, i32
  }
  func.func @transform_4(%arg0: i32) -> (i32, i32) {
    %c0_i32 = arith.constant 0 : i32
    %c0_i32_0 = arith.constant 0 : i32
    %c0_i32_1 = arith.constant 0 : i32
    return %c0_i32, %c0_i32_0 : i32, i32
  }
  func.func @transform_5(%arg0: i32) -> (i32, i32) {
    %c0_i32 = arith.constant 0 : i32
    %c0_i32_0 = arith.constant 0 : i32
    %c0_i32_1 = arith.constant 0 : i32
    return %c0_i32, %c0_i32_0 : i32, i32
  }
  func.func @transform_6(%arg0: i32) -> (i32, i32) {
    %c0_i32 = arith.constant 0 : i32
    %c0_i32_0 = arith.constant 0 : i32
    %c0_i32_1 = arith.constant 0 : i32
    return %c0_i32, %c0_i32_0 : i32, i32
  }
  func.func @transform_7(%arg0: i32) -> (i32, i32) {
    %c0_i32 = arith.constant 0 : i32
    %c0_i32_0 = arith.constant 0 : i32
    return %arg0, %c0_i32 : i32, i32
  }
}

</mosaic_0001>

<bundles_post_ra>
// kernel: tpu_custom_call.1
= control target key start
LH: loop header
LB: loop body
LE: loop exit
PB: predicated region body
PF: predicated region fallthrough
CT: control target
= control target key end

     0   :  { %12 = vsyncpa [#allocation3], 0  ;;  %s1019_s0 = inlined_call_operand.hbm [shape: f32[8,256], index: 0, kind: input, shape index: {}]   ;;  %s1020_s1 = inlined_call_operand.hbm [shape: bf16[256,256], index: 1, kind: input, shape index: {}]   ;;  %s1021_s2 = inlined_call_operand.vmem [shape: f32[1,256], index: 2, kind: input, shape index: {}]   ;;  %s1022_s3 = inlined_call_operand.hbm [shape: bf16[256,128], index: 3, kind: input, shape index: {}]   ;;  %s1023_s4 = inlined_call_operand.vmem [shape: f32[1,128], index: 4, kind: input, shape index: {}]   ;;  %s1024_s5 = inlined_call_operand.hbm [shape: bf16[128,128], index: 5, kind: input, shape index: {}]   ;;  %s1025_s6 = inlined_call_operand.vmem [shape: f32[1,128], index: 6, kind: input, shape index: {}]   ;;  %s1026_s7 = inlined_call_operand.hbm [shape: bf16[8,128], index: 7, kind: output, shape index: {}]  }
   0x1   :  { %13 = vsyncpa [#allocation6], 0 }
   0x2   :  { %14 = vsyncpa [#allocation9], 0 }
   0x3   :  { %15 = vsyncpa [#allocation4], 0  ;;  %s944_s24 = smov [#allocation5]  }
   0x4   :  { %s31_s25 = sshll.u32 %s944_s24, 4  ;;  %s32_s25 = int_to_ptr.vmem [resolvable:$true] %s31_s25 }
   0x5   :  { %s844_s26 = scalar_lea.vmem %s32_s25, 4096  ;;  %p849_p1 = scmp.lt.s32.totalorder %s32_s25, %s32_s25 }
   0x6   :  { %p845_p0 = scmp.ne.s32.totalorder %s32_s25, %s844_s26  ;;  %p850_p2 = scmp.lt.s32.totalorder %s844_s26, %s844_s26 }
   0x8   :  { %p851_p3 = por %p850_p2, %p849_p1 }
   0xa   :  { %p852_p4 = pnand %p851_p3, %p845_p0 }
   0xc   :  { %855 = shalt.err (!%p852_p4)
}
   0xd   :  { %s945_s27 = smov 128   ;;  %s946_s28 = smov 8  }
   0xe   :  { %37 = dma.hbm_to_vmem [thread:$0]  %s1020_s1, 4096, %s32_s25, [#allocation6], %s945_s27, %s945_s27, %s946_s28  }
   0xf   :  { %s947_s8 = smov [#allocation2]   ;;  %s948_s10 = smov [#allocation7]  }
  0x10   :  { %s22_s9 = sshll.u32 %s947_s8, 4  ;;  %s45_s11 = sshll.u32 %s948_s10, 4  ;;  %s23_s9 = int_to_ptr.vmem [resolvable:$true] %s22_s9  ;;  %s46_s11 = int_to_ptr.vmem [resolvable:$true] %s45_s11 }
  0x11   :  { %s864_s12 = scalar_lea.vmem %s23_s9, 256  ;;  %p869_p6 = scmp.lt.s32.totalorder %s23_s9, %s23_s9 }
  0x12   :  { %p865_p5 = scmp.ne.s32.totalorder %s23_s9, %s864_s12  ;;  %p870_p7 = scmp.lt.s32.totalorder %s864_s12, %s864_s12 }
  0x14   :  { %p871_p8 = por %p870_p7, %p869_p6 }
  0x16   :  { %p872_p9 = pnand %p871_p8, %p865_p5 }
  0x18   :  { %875 = shalt.err (!%p872_p9)
}
  0x19   :  { %25 = dma.hbm_to_vmem [thread:$0]  %s1019_s0, 256, %s23_s9, [#allocation3]  }
  0x1a   :  { %s884_s15 = scalar_lea.vmem %s46_s11, 2048  ;;  %p889_p11 = scmp.lt.s32.totalorder %s46_s11, %s46_s11 }
  0x1b   :  { %p885_p10 = scmp.ne.s32.totalorder %s46_s11, %s884_s15  ;;  %p890_p12 = scmp.lt.s32.totalorder %s884_s15, %s884_s15 }
  0x1d   :  { %p891_p13 = por %p890_p12, %p889_p11 }
  0x1f   :  { %p892_p0 = pnand %p891_p13, %p885_p10 }
  0x21   :  { %895 = shalt.err (!%p892_p0)
}
  0x22   :  { %s949_s1 = smov 64   ;;  %s950_s16 = smov 4  }
  0x23   :  { %51 = dma.hbm_to_vmem [thread:$0]  %s1022_s3, 2048, %s46_s11, [#allocation6], %s949_s1, %s949_s1, %s950_s16  }
  0x24   :  { %s951_s19 = smov [#allocation8]  }
  0x25   :  { %s59_s20 = sshll.u32 %s951_s19, 4  ;;  %s60_s20 = int_to_ptr.vmem [resolvable:$true] %s59_s20 }
  0x26   :  { %s904_s21 = scalar_lea.vmem %s60_s20, 1024  ;;  %p909_p2 = scmp.lt.s32.totalorder %s60_s20, %s60_s20 }
  0x27   :  { %p905_p1 = scmp.ne.s32.totalorder %s60_s20, %s904_s21  ;;  %p910_p3 = scmp.lt.s32.totalorder %s904_s21, %s904_s21 }
  0x29   :  { %p911_p4 = por %p910_p3, %p909_p2 }
  0x2b   :  { %p912_p5 = pnand %p911_p4, %p905_p1 }
  0x2d   :  { %915 = shalt.err (!%p912_p5)
}
  0x2e   :  { %65 = dma.hbm_to_vmem [thread:$0]  %s1024_s5, 1024, %s60_s20, [#allocation9], %s949_s1, %s949_s1, %s950_s16  }
  0x2f   :  { %936 = dma.done.wait [#allocation3], 256  }
  0x30   :  { %937 = vsyncadd [#allocation3], 4294967040 }
  0x31   :  { %938 = dma.done.wait [#allocation6], 6144  }
  0x32   :  { %939 = vsyncadd [#allocation6], 4294961152 }
  0x33   :  { %940 = dma.done.wait [#allocation9], 1024  }
  0x34   :  { %941 = vsyncadd [#allocation9], 4294966272  ;;  %v762_v0 = vld [vmem:[#allocation5 + $0x74] ss:$8 sps:$4 sm:$0xff]   ;;  %v764_v1 = vld [vmem:[#allocation5 + $0x70] ss:$8 sps:$4 sm:$0xff]   ;;  %v119_v53 = vlaneseq }
  0x35   :  { %289 = vmatprep.subr.bf16.mxu0 %v762_v0  ;;  %v765_v2 = vld [vmem:[#allocation5 + $0x64] ss:$8 sps:$4 sm:$0xff]   ;;  %v767_v3 = vld [vmem:[#allocation5 + $0x60] ss:$8 sps:$4 sm:$0xff]   ;;  %v768_v4 = vld [vmem:[#allocation5 + $0x54] ss:$8 sps:$4 sm:$0xff]  }
  0x36   :  { %290 = vmatpush1.bf16.msra.mxu0 %v764_v1  ;;  %v770_v5 = vld [vmem:[#allocation5 + $0x50] ss:$8 sps:$4 sm:$0xff]   ;;  %v771_v6 = vld [vmem:[#allocation5 + $0x44] ss:$8 sps:$4 sm:$0xff]   ;;  %v773_v7 = vld [vmem:[#allocation5 + $0x40] ss:$8 sps:$4 sm:$0xff]  }
  0x37   :  { %291 = vmatprep.subr.bf16.mxu0 %v765_v2  ;;  %v774_v8 = vld [vmem:[#allocation5 + $0x34] ss:$8 sps:$4 sm:$0xff]   ;;  %v776_v9 = vld [vmem:[#allocation5 + $0x30] ss:$8 sps:$4 sm:$0xff]   ;;  %v777_v10 = vld [vmem:[#allocation5 + $0x24] ss:$8 sps:$4 sm:$0xff]  }
  0x38   :  { %v779_v11 = vld [vmem:[#allocation5 + $0x20] ss:$8 sps:$4 sm:$0xff]   ;;  %v780_v12 = vld [vmem:[#allocation5 + $0x14] ss:$8 sps:$4 sm:$0xff]   ;;  %v782_v13 = vld [vmem:[#allocation5 + $0x10] ss:$8 sps:$4 sm:$0xff]  }
  0x39   :  { %v82_v14 = vld [vmem:[#allocation2 + $0x8] sm:$0xff]  ;;  %v783_v15 = vld [vmem:[#allocation5 + $0x4] ss:$8 sps:$4 sm:$0xff]   ;;  %v812_v19 = vld [vmem:[#allocation7 + $0x70] sm:$0xff]   ;;  %v952_v52 = vmov 0.0   ;;  %v120_v54 = vshrl.u32 %v119_v53, 7 }
  0x3a   :  { %292 = vmatpush1.bf16.msra.mxu0 %v767_v3  ;;  %v84_v16 = vpack.c.bf16 %v82_v14, %v82_v14  ;;  %v810_v17 = vld [vmem:[#allocation7 + $0x78] sm:$0xff]   ;;  %v785_v20 = vld [vmem:[#allocation5] ss:$8 sps:$4 sm:$0xff]   ;;  %v813_v21 = vld [vmem:[#allocation7 + $0x30] sm:$0xff]   ;;  %vm953_vm0 = vmmov 0   ;;  %s954_s26 = smov [#allocation10]  }
  0x3b   :  { %293 = vmatprep.subr.bf16.mxu0 %v768_v4  ;;  %v811_v18 = vld [vmem:[#allocation7 + $0x38] sm:$0xff]   ;;  %700 = vmatprep.subr.bf16.mxu1 %v810_v17  ;;  %v814_v22 = vld [vmem:[#allocation7 + $0x68] sm:$0xff]   ;;  %v816_v26 = vld [vmem:[#allocation7 + $0x60] sm:$0xff]   ;;  %v121_v55 = vsub.s32 0, %v120_v54  ;;  %v125_v57 = vsub.s32 1, %v120_v54 }
  0x3c   :  { %321 = vmatprep.mubr.bf16.mxu0 %v84_v16  ;;  %701 = vmatpush3.bf16.msra.mxu1 %v811_v18  ;;  %v786_v23 = vld [vmem:[#allocation5 + $0xf4] ss:$8 sps:$4 sm:$0xff]   ;;  %v788_v24 = vld [vmem:[#allocation5 + $0xf0] ss:$8 sps:$4 sm:$0xff]   ;;  %v815_v25 = vld [vmem:[#allocation7 + $0x28] sm:$0xff]  }
  0x3d   :  { %702 = vmatprep.subr.bf16.mxu1 %v812_v19  ;;  %v789_v27 = vld [vmem:[#allocation5 + $0xe4] ss:$8 sps:$4 sm:$0xff]   ;;  %v791_v28 = vld [vmem:[#allocation5 + $0xe0] ss:$8 sps:$4 sm:$0xff]   ;;  %v792_v30 = vld [vmem:[#allocation5 + $0xd4] ss:$8 sps:$4 sm:$0xff]  }
  0x3e   :  { %294 = vmatpush1.bf16.msra.mxu0 %v770_v5  ;;  %v817_v29 = vld [vmem:[#allocation7 + $0x20] sm:$0xff]   ;;  %v818_v31 = vld [vmem:[#allocation7 + $0x58] sm:$0xff]   ;;  %v820_v34 = vld [vmem:[#allocation7 + $0x50] sm:$0xff]  }
  0x3f   :  { %295 = vmatprep.subr.bf16.mxu0 %v771_v6  ;;  %v819_v32 = vld [vmem:[#allocation7 + $0x18] sm:$0xff]   ;;  %v795_v35 = vld [vmem:[#allocation5 + $0xc4] ss:$8 sps:$4 sm:$0xff]   ;;  %v821_v36 = vld [vmem:[#allocation7 + $0x10] sm:$0xff]  }
  0x40   :  { %703 = vmatpush3.bf16.msra.mxu1 %v813_v21  ;;  %v794_v33 = vld [vmem:[#allocation5 + $0xd0] ss:$8 sps:$4 sm:$0xff]   ;;  %v797_v37 = vld [vmem:[#allocation5 + $0xc0] ss:$8 sps:$4 sm:$0xff]   ;;  %v798_v38 = vld [vmem:[#allocation5 + $0xb4] ss:$8 sps:$4 sm:$0xff]  }
  0x41   :  { %704 = vmatprep.subr.bf16.mxu1 %v814_v22  ;;  %v800_v39 = vld [vmem:[#allocation5 + $0xb0] ss:$8 sps:$4 sm:$0xff]   ;;  %v801_v40 = vld [vmem:[#allocation5 + $0xa4] ss:$8 sps:$4 sm:$0xff]   ;;  %v803_v41 = vld [vmem:[#allocation5 + $0xa0] ss:$8 sps:$4 sm:$0xff]  }
  0x42   :  { %296 = vmatpush1.bf16.msra.mxu0 %v773_v7  ;;  %v804_v42 = vld [vmem:[#allocation5 + $0x94] ss:$8 sps:$4 sm:$0xff]   ;;  %v806_v43 = vld [vmem:[#allocation5 + $0x90] ss:$8 sps:$4 sm:$0xff]   ;;  %v807_v44 = vld [vmem:[#allocation5 + $0x84] ss:$8 sps:$4 sm:$0xff]  }
  0x43   :  { %297 = vmatprep.subr.bf16.mxu0 %v774_v8  ;;  %v809_v45 = vld [vmem:[#allocation5 + $0x80] ss:$8 sps:$4 sm:$0xff]   ;;  %v81_v46 = vld [vmem:[#allocation2] sm:$0xff]  ;;  %v826_v5 = vld [vmem:[#allocation8 + $0x38] sm:$0xff]  }
  0x44   :  { %705 = vmatpush3.bf16.msra.mxu1 %v815_v25  ;;  %v83_v47 = vpack.c.bf16 %v81_v46, %v81_v46  ;;  %v822_v48 = vld [vmem:[#allocation7 + $0x48] sm:$0xff]   ;;  %v824_v50 = vld [vmem:[#allocation7 + $0x40] sm:$0xff]   ;;  %v117_v56 = vld [vmem:[%s1021_s2] sm:$0x3] }
  0x45   :  { %706 = vmatprep.subr.bf16.mxu1 %v816_v26  ;;  %v823_v49 = vld [vmem:[#allocation7 + $0x8] sm:$0xff]   ;;  %v825_v51 = vld [vmem:[#allocation7] sm:$0xff]   ;;  %v122_v58 = vrot.slane %v117_v56, %v121_v55  ;;  %v126_v59 = vrot.slane %v117_v56, %v125_v57  ;;  %v827_v7 = vld [vmem:[#allocation8 + $0x30] sm:$0xff]  }
  0x46   :  { %298 = vmatpush1.bf16.msra.mxu0 %v776_v9  ;;  %v828_v8 = vld [vmem:[#allocation8 + $0x28] sm:$0xff]   ;;  %v829_v9 = vld [vmem:[#allocation8 + $0x20] sm:$0xff]  }
  0x47   :  { %299 = vmatprep.subr.bf16.mxu0 %v777_v10  ;;  %v830_v10 = vld [vmem:[#allocation8 + $0x18] sm:$0xff]  }
  0x48   :  { %707 = vmatpush3.bf16.msra.mxu1 %v817_v29 }
  0x49   :  { %708 = vmatprep.subr.bf16.mxu1 %v818_v31 }
  0x4a   :  { %300 = vmatpush1.bf16.msra.mxu0 %v779_v11  ;;  %v831_v11 = vld [vmem:[#allocation8 + $0x10] sm:$0xff]  }
  0x4b   :  { %301 = vmatprep.subr.bf16.mxu0 %v780_v12  ;;  %v832_v12 = vld [vmem:[#allocation8 + $0x8] sm:$0xff]  }
  0x4c   :  { %709 = vmatpush3.bf16.msra.mxu1 %v819_v32 }
  0x4d   :  { %710 = vmatprep.subr.bf16.mxu1 %v820_v34 }
  0x4e   :  { %302 = vmatpush1.bf16.msra.mxu0 %v782_v13  ;;  %v833_v13 = vld [vmem:[#allocation8] sm:$0xff]  }
  0x4f   :  { %303 = vmatprep.subr.bf16.mxu0 %v783_v15  ;;  %v674_v15 = vld [vmem:[%s1023_s4] ss:$0 sm:$0xff]  ;;  %s631_s4 = sshll.u32 %s954_s26, 4  ;;  %s632_s4 = int_to_ptr.vmem [resolvable:$true] %s631_s4 }
  0x50   :  { %711 = vmatpush3.bf16.msra.mxu1 %v821_v36  ;;  %s916_s27 = scalar_lea.vmem %s632_s4, 64  ;;  %p921_p7 = scmp.lt.s32.totalorder %s632_s4, %s632_s4 }
  0x51   :  { %712 = vmatprep.subr.bf16.mxu1 %v822_v48  ;;  %p917_p6 = scmp.ne.s32.totalorder %s632_s4, %s916_s27  ;;  %p922_p8 = scmp.lt.s32.totalorder %s916_s27, %s916_s27 }
  0x52   :  { %304 = vmatpush1.bf16.msra.mxu0 %v785_v20 }
  0x53   :  { %305 = vmatprep.subr.bf16.mxu0 %v786_v23  ;;  %v691_v23 = vld [vmem:[%s1025_s6] ss:$0 sm:$0xff]  ;;  %p923_p9 = por %p922_p8, %p921_p7 }
  0x54   :  { %713 = vmatpush3.bf16.msra.mxu1 %v823_v49 }
  0x55   :  { %714 = vmatprep.subr.bf16.mxu1 %v824_v50  ;;  %p924_p10 = pnand %p923_p9, %p917_p6 }
  0x56   :  { %306 = vmatpush2.bf16.msra.mxu0 %v788_v24 }
  0x57   :  { %307 = vmatprep.subr.bf16.mxu0 %v789_v27 }
  0x58   :  { %715 = vmatpush3.bf16.msra.mxu1 %v825_v51 }
  0x59   :  { %731 = vmatprep.subr.bf16.mxu1 %v952_v52 }
  0x5a   :  { %308 = vmatpush2.bf16.msra.mxu0 %v791_v28 }
  0x5b   :  { %309 = vmatprep.subr.bf16.mxu0 %v792_v30 }
  0x5e   :  { %310 = vmatpush2.bf16.msra.mxu0 %v794_v33 }
  0x5f   :  { %311 = vmatprep.subr.bf16.mxu0 %v795_v35 }
  0x62   :  { %312 = vmatpush2.bf16.msra.mxu0 %v797_v37 }
  0x63   :  { %313 = vmatprep.subr.bf16.mxu0 %v798_v38 }
  0x66   :  { %314 = vmatpush2.bf16.msra.mxu0 %v800_v39 }
  0x67   :  { %315 = vmatprep.subr.bf16.mxu0 %v801_v40 }
  0x6a   :  { %316 = vmatpush2.bf16.msra.mxu0 %v803_v41 }
  0x6b   :  { %317 = vmatprep.subr.bf16.mxu0 %v804_v42 }
  0x6e   :  { %318 = vmatpush2.bf16.msra.mxu0 %v806_v43 }
  0x6f   :  { %319 = vmatprep.subr.bf16.mxu0 %v807_v44 }
  0x72   :  { %320 = vmatpush2.bf16.msra.mxu0 %v809_v45 }
  0x75   :  { %322 = vmatmul.mubr.bf16.vlgmr.msra.gmra.mxu0 %v83_v47 }
 0x135   :  { %v323_v60 = vpop.f32.mrf.mxu0 }
 0x136   :  { %v324_v61 = vadd.f32 %v323_v60, %v122_v58 }
 0x137   :  { %v325_v62 = vpop.f32.mrf.mxu0 }
 0x138   :  { %v326_v63 = vadd.f32 %v325_v62, %v126_v59  ;;  %v330_v0 = vmax.f32 %v324_v61, 0.0 }
 0x139   :  { %v327_v1 = vpop.f32.mrf.mxu0 }
 0x13a   :  { %v331_v2 = vmax.f32 %v326_v63, 0.0  ;;  %v332_v6 = vpack.c.bf16 %v330_v0, %v330_v0 }
 0x13b   :  { %v328_v3 = vpop.f32.mrf.mxu0 }
 0x13c   :  { %v333_v4 = vpack.c.bf16 %v331_v2, %v331_v2 }
 0x13e   :  { %501 = vmatprep.mubr.bf16.mxu1 %v333_v4 }
 0x13f   :  { %502 = vmatmul.mubr.bf16.vlgmr.msra.gmra.mxu1 %v332_v6 }
 0x140   :  { %732 = vmatpush3.bf16.msra.mxu1 %v826_v5  ;;  %747 = vmatprep.mubr.msk.bf16.mxu1 %vm953_vm0, %v952_v52 }
 0x141   :  { %733 = vmatprep.subr.bf16.mxu1 %v952_v52 }
 0x144   :  { %734 = vmatpush3.bf16.msra.mxu1 %v827_v7 }
 0x145   :  { %735 = vmatprep.subr.bf16.mxu1 %v952_v52 }
 0x148   :  { %736 = vmatpush3.bf16.msra.mxu1 %v828_v8 }
 0x149   :  { %737 = vmatprep.subr.bf16.mxu1 %v952_v52 }
 0x14c   :  { %738 = vmatpush3.bf16.msra.mxu1 %v829_v9 }
 0x14d   :  { %739 = vmatprep.subr.bf16.mxu1 %v952_v52 }
 0x150   :  { %740 = vmatpush3.bf16.msra.mxu1 %v830_v10 }
 0x151   :  { %741 = vmatprep.subr.bf16.mxu1 %v952_v52 }
 0x154   :  { %742 = vmatpush3.bf16.msra.mxu1 %v831_v11 }
 0x155   :  { %743 = vmatprep.subr.bf16.mxu1 %v952_v52 }
 0x158   :  { %744 = vmatpush3.bf16.msra.mxu1 %v832_v12 }
 0x159   :  { %745 = vmatprep.subr.bf16.mxu1 %v952_v52 }
 0x15c   :  { %746 = vmatpush3.bf16.msra.mxu1 %v833_v13 }
 0x1ff   :  { %v716_v14 = vpop.f32.mrf.mxu1 }
 0x201   :  { %v717_v16 = vpop.f32.mrf.mxu1 }
 0x202   :  { %v718_v17 = vadd.f32 %v717_v16, %v716_v14 }
 0x203   :  { %v719_v18 = vpop.f32.mrf.mxu1 }
 0x204   :  { %v504_v19 = vadd.f32 %v718_v17, %v674_v15 }
 0x205   :  { %v720_v20 = vpop.f32.mrf.mxu1 }
 0x206   :  { %v509_v21 = vmax.f32 %v504_v19, 0.0 }
 0x208   :  { %v510_v22 = vpack.c.bf16 %v509_v21, %v509_v21 }
 0x20a   :  { %748 = vmatmul.mubr.bf16.vlgmr.msra.gmra.mxu1 %v510_v22 }
 0x2ca   :  { %v616_v24 = vpop.f32.mrf.mxu1 }
 0x2cb   :  { %v617_v25 = vadd.f32 %v691_v23, %v616_v24 }
 0x2cc   :  { %v749_v26 = vpop.f32.mrf.mxu1 }
 0x2cd   :  { %834 = vtanh.f32 %v617_v25 }
 0x2ce   :  { %v619_v27 = vpop.f32.mrf.mxu1 }
 0x2d0   :  { %v750_v28 = vpop.f32.mrf.mxu1 }
 0x2da   :  { %v835_v29 = vpop.eup %834 }
 0x2db   :  { %v623_v30 = vpack.c.bf16 %v835_v29, %v835_v29 }
 0x2dd   :  { %624 = vst [vmem:[#allocation10] sm:$0xf] %v623_v30 }
 0x2de   :  { %927 = shalt.err (!%p924_p10)
}
 0x2df   :  { %634 = dma.vmem_to_hbm [thread:$0]  %s632_s4, 64, %s1026_s7, [#allocation4]  }
 0x2e0   :  { %942 = dma.done.wait [#allocation4], 64  }
 0x2e1   :  { %943 = vsyncadd [#allocation4], 4294967232 }
 0x2e2   :  { %638 = vsyncpa [#allocation3], 1 }
 0x2e3   :  { %639 = vsyncpa [#allocation6], 1 }
 0x2e4   :  { %640 = vsyncpa [#allocation9], 1 }
 0x2e5   :  { %641 = vsyncpa [#allocation4], 1 }

</bundles_post_ra>
